<compile_context>
chip_gen: v7x
topology: tpu7x:2x2x1
jax: 0.10.0
libtpu: 0.0.40
codegen_flags: <defaults>
</compile_context>

<pallas_src>
import functools

import jax
import jax.numpy as jnp
from jax.experimental import pallas as pl
from jax.experimental.pallas import tpu as pltpu

_EPS = 1e-6   # F.pairwise_distance default eps
_LANE = 128   # lane width for the lane-dense partial-sum output


def _triplet_loss_kernel(a_ref, p_ref, n_ref, o_ref, *, margin, batch, tile_b):
    i = pl.program_id(0)

    a = a_ref[...].astype(jnp.float32)
    p = p_ref[...].astype(jnp.float32)
    n = n_ref[...].astype(jnp.float32)

    # Keep intermediates 2-D: (TB, 1) reductions over the lane (feature) axis.
    dp = jnp.sqrt(jnp.sum((a - p + _EPS) ** 2, axis=-1, keepdims=True))
    dn = jnp.sqrt(jnp.sum((a - n + _EPS) ** 2, axis=-1, keepdims=True))

    losses = jnp.maximum(dp - dn + margin, 0.0)  # (TB, 1)

    # Mask rows past the true batch size (last tile may be ragged/padded).
    # Select (not multiply) so garbage/NaN in padded rows cannot leak through.
    row = i * tile_b + jax.lax.broadcasted_iota(jnp.int32, losses.shape, 0)
    losses = jnp.where(row < batch, losses, 0.0)

    # Per-tile partial sum, broadcast across 128 lanes -> unmasked lane-dense
    # store; each grid step owns its own output block (safe under "parallel").
    o_ref[...] = jnp.full(o_ref.shape, jnp.sum(losses), dtype=jnp.float32)


def _sublane_multiple(dtype):
    # Minimum sublane tile: 8 for 4-byte, 16 for 2-byte, 32 for 1-byte dtypes.
    return max(8, 32 // jnp.dtype(dtype).itemsize)


def _round_up(x, m):
    return ((x + m - 1) // m) * m


def _vmem_budget_and_limit():
    """Per-generation (input-tile VMEM budget, scoped vmem_limit_bytes)."""
    v7x_safe = (40 * 1024 * 1024, 48 * 1024 * 1024)   # 64 MiB physical VMEM
    physical = None
    try:
        info = pltpu.get_tpu_info()
        physical = getattr(info, "vmem_capacity_bytes", None)
    except Exception:
        physical = None
    if physical is None:
        return v7x_safe                                 # safe on every chip
    if physical >= 100 * 1024 * 1024:                   # v5e / v6e: 128 MiB
        return 88 * 1024 * 1024, 104 * 1024 * 1024
    return v7x_safe                                     # v7x: 64 MiB


def _pick_tile_b(B, D, dtype, vmem_budget_bytes,
                 target_step_bytes=8 * 1024 * 1024):
    """Pick the batch tile size.

    * Each grid step should move ~target_step_bytes of input (3 arrays) so the
      fixed per-step overhead is amortized (>= ~85% of HBM roofline).
    * 3 inputs x 2 double-buffers of (tile_b, D_pad) must stay inside the
      per-generation VMEM budget; D is padded to 128 lanes for the estimate.
    * tile_b is a multiple of the dtype's minimum sublane tile.
    * Bias toward an even tile count >= 2 so v7x's two TensorCores both work.
    """
    itemsize = jnp.dtype(dtype).itemsize
    sub = _sublane_multiple(dtype)
    d_pad = _round_up(max(D, _LANE), _LANE)      # lane padding inside VMEM
    row_bytes = d_pad * itemsize                 # per input array, per row

    max_tb_vmem = max(sub, vmem_budget_bytes // (6 * row_bytes))   # 3 in x 2 buf
    target_tb = max(sub, target_step_bytes // (3 * row_bytes))
    tb = min(max_tb_vmem, target_tb)
    tb = max(sub, (tb // sub) * sub)

    if B <= tb:
        # Single-tile fast path.  Split in two when cleanly possible so the
        # "parallel" axis shards across both v7x TensorCores (free on v5e/v6e).
        half = _round_up(-(-B // 2), sub)
        if half < B:
            return half
        return B                                  # one full-extent tile

    # Multi-tile: bias the tile count toward a multiple of 2 for v7x balance.
    nt = -(-B // tb)
    if nt % 2 == 1:
        tb_even = _round_up(-(-B // (nt + 1)), sub)
        if 0 < tb_even <= tb and -(-B // tb_even) == nt + 1:
            tb = tb_even
    return tb


def triplet_loss(anchor, positive, negative, margin=1.0, tile_b=None,
                 input_buffers=2):
    assert anchor.shape == positive.shape == negative.shape
    assert anchor.ndim == 2
    B, D = anchor.shape
    dtype = anchor.dtype
    itemsize = jnp.dtype(dtype).itemsize
    sub = _sublane_multiple(dtype)

    vmem_budget, vmem_limit = _vmem_budget_and_limit()

    if tile_b is None:
        tile_b = _pick_tile_b(B, D, dtype, vmem_budget)
    else:
        tile_b = min(int(tile_b), B)
        if tile_b < B:
            tile_b = max(sub, (tile_b // sub) * sub)

    num_tiles = pl.cdiv(B, tile_b)

    kernel = functools.partial(
        _triplet_loss_kernel, margin=float(margin), batch=B, tile_b=tile_b
    )

    spec_kwargs = {}
    if int(input_buffers) != 2:
        # Optional deeper pipelining for tiny tiles (sweepable; default off).
        spec_kwargs["pipeline_mode"] = pl.Buffered(int(input_buffers))
    in_spec = pl.BlockSpec((tile_b, D), lambda i: (i, 0), **spec_kwargs)

    out = pl.pallas_call(
        kernel,
        out_shape=jax.ShapeDtypeStruct((num_tiles, _LANE), jnp.float32),
        grid=(num_tiles,),
        in_specs=[in_spec, in_spec, in_spec],
        out_specs=pl.BlockSpec((1, _LANE), lambda i: (i, 0)),
        compiler_params=pltpu.CompilerParams(
            dimension_semantics=("parallel",),
            vmem_limit_bytes=vmem_limit,
        ),
        cost_estimate=pl.CostEstimate(
            flops=8 * B * D,
            transcendentals=2 * B,
            bytes_accessed=3 * B * D * itemsize + num_tiles * _LANE * 4,
        ),
    )(anchor, positive, negative)

    # Finish the mean in the wrapper: sum of per-tile partials / true B.
    return jnp.sum(out[:, 0]) / B


def _reference(anchor, positive, negative, margin=1.0):
    a = anchor.astype(jnp.float32)
    p = positive.astype(jnp.float32)
    n = negative.astype(jnp.float32)
    dp = jnp.sqrt(jnp.sum((a - p + _EPS) ** 2, axis=-1))
    dn = jnp.sqrt(jnp.sum((a - n + _EPS) ** 2, axis=-1))
    return jnp.mean(jnp.maximum(dp - dn + margin, 0.0))


if __name__ == "__main__":
    key = jax.random.PRNGKey(0)
    k1, k2, k3, k4, k5, k6 = jax.random.split(key, 6)

    # Case 1: small batch of embeddings (single full-extent tile path).
    B, D = 8, 128
    anchor = jax.random.normal(k1, (B, D), dtype=jnp.float32)
    positive = jax.random.normal(k2, (B, D), dtype=jnp.float32)
    negative = jax.random.normal(k3, (B, D), dtype=jnp.float32)

    loss = jax.block_until_ready(triplet_loss(anchor, positive, negative, margin=1.0))
    ref = _reference(anchor, positive, negative, margin=1.0)
    assert jnp.allclose(loss, ref, rtol=1e-5, atol=1e-5), (loss, ref)

    # Case 2: auto tile picking -> even tile split with a ragged last tile
    # (exercises the dual-TC bias + padded-row masking paths).
    B2, D2 = 300, 64
    a2 = jax.random.normal(k4, (B2, D2), dtype=jnp.float32)
    p2 = jax.random.normal(k5, (B2, D2), dtype=jnp.float32)
    n2 = jax.random.normal(k6, (B2, D2), dtype=jnp.float32)

    loss2 = jax.block_until_ready(triplet_loss(a2, p2, n2, margin=1.0))
    ref2 = _reference(a2, p2, n2, margin=1.0)
    assert jnp.allclose(loss2, ref2, rtol=1e-5, atol=1e-5), (loss2, ref2)

    # Case 3: explicit tile_b -> 3-tile grid with a ragged last tile.
    loss3 = jax.block_until_ready(triplet_loss(a2, p2, n2, margin=1.0, tile_b=128))
    assert jnp.allclose(loss3, ref2, rtol=1e-5, atol=1e-5), (loss3, ref2)

    print("KERNEL_OK")
</pallas_src>

<mosaic_0001>
module attributes {stable_mosaic.version = 11 : i64} {
  func.func @_triplet_loss_kernel(%arg0: i32, %arg1: memref<8x128xf32, #tpu.memory_space<vmem>>, %arg2: memref<8x128xf32, #tpu.memory_space<vmem>>, %arg3: memref<8x128xf32, #tpu.memory_space<vmem>>, %arg4: memref<1x128xf32, #tpu.memory_space<vmem>>) attributes {dimension_semantics = [#tpu.dimension_semantics<parallel>], iteration_bounds = array<i64: 1>, scalar_prefetch = 0 : i64, scratch_operands = 0 : i64, tpu.core_type = #tpu.core_type<tc>, window_params = [{transform_indices = @transform_0, window_bounds = array<i64: 8, 128>}, {transform_indices = @transform_1, window_bounds = array<i64: 8, 128>}, {transform_indices = @transform_2, window_bounds = array<i64: 8, 128>}, {transform_indices = @transform_3, window_bounds = array<i64: 1, 128>}]} {
    %c0 = arith.constant 0 : index
    %c0_0 = arith.constant 0 : index
    %0 = vector.load %arg1[%c0, %c0_0] : memref<8x128xf32, #tpu.memory_space<vmem>>, vector<8x128xf32>
    %c0_1 = arith.constant 0 : index
    %c0_2 = arith.constant 0 : index
    %1 = vector.load %arg2[%c0_1, %c0_2] : memref<8x128xf32, #tpu.memory_space<vmem>>, vector<8x128xf32>
    %c0_3 = arith.constant 0 : index
    %c0_4 = arith.constant 0 : index
    %2 = vector.load %arg3[%c0_3, %c0_4] : memref<8x128xf32, #tpu.memory_space<vmem>>, vector<8x128xf32>
    %3 = arith.subf %0, %1 : vector<8x128xf32>
    %cst = arith.constant 9.99999997E-7 : f32
    %4 = vector.broadcast %cst : f32 to vector<8x128xf32>
    %5 = arith.addf %3, %4 : vector<8x128xf32>
    %6 = arith.mulf %5, %5 : vector<8x128xf32>
    %cst_5 = arith.constant dense<0.000000e+00> : vector<8xf32>
    %7 = vector.multi_reduction <add>, %6, %cst_5 [1] : vector<8x128xf32> to vector<8xf32>
    %8 = vector.shape_cast %7 : vector<8xf32> to vector<8x1xf32>
    %9 = math.sqrt %8 : vector<8x1xf32>
    %10 = arith.subf %0, %2 : vector<8x128xf32>
    %cst_6 = arith.constant 9.99999997E-7 : f32
    %11 = vector.broadcast %cst_6 : f32 to vector<8x128xf32>
    %12 = arith.addf %10, %11 : vector<8x128xf32>
    %13 = arith.mulf %12, %12 : vector<8x128xf32>
    %cst_7 = arith.constant dense<0.000000e+00> : vector<8xf32>
    %14 = vector.multi_reduction <add>, %13, %cst_7 [1] : vector<8x128xf32> to vector<8xf32>
    %15 = vector.shape_cast %14 : vector<8xf32> to vector<8x1xf32>
    %16 = math.sqrt %15 : vector<8x1xf32>
    %17 = arith.subf %9, %16 : vector<8x1xf32>
    %cst_8 = arith.constant 1.000000e+00 : f32
    %18 = vector.broadcast %cst_8 : f32 to vector<8x1xf32>
    %19 = arith.addf %17, %18 : vector<8x1xf32>
    %cst_9 = arith.constant 0.000000e+00 : f32
    %20 = vector.broadcast %cst_9 : f32 to vector<8x1xf32>
    %21 = arith.maximumf %19, %20 : vector<8x1xf32>
    %c8_i32 = arith.constant 8 : i32
    %22 = arith.muli %arg0, %c8_i32 : i32
    %23 = tpu.iota {dimensions = array<i32: 0>} : vector<8x1xi32>
    %24 = vector.broadcast %22 : i32 to vector<8x1xi32>
    %25 = arith.addi %24, %23 : vector<8x1xi32>
    %c8_i32_10 = arith.constant 8 : i32
    %26 = vector.broadcast %c8_i32_10 : i32 to vector<8x1xi32>
    %27 = arith.cmpi slt, %25, %26 : vector<8x1xi32>
    %cst_11 = arith.constant 0.000000e+00 : f32
    %28 = vector.broadcast %cst_11 : f32 to vector<8x1xf32>
    %29 = arith.select %27, %21, %28 : vector<8x1xi1>, vector<8x1xf32>
    %30 = vector.shape_cast %29 : vector<8x1xf32> to vector<1x8x1xf32>
    %cst_12 = arith.constant dense<0.000000e+00> : vector<1xf32>
    %31 = vector.multi_reduction <add>, %30, %cst_12 [1, 2] : vector<1x8x1xf32> to vector<1xf32>
    %32 = vector.shape_cast %31 : vector<1xf32> to vector<1x1x1xf32>
    %33 = vector.extract %32[0, 0, 0] : f32 from vector<1x1x1xf32>
    %34 = vector.broadcast %33 : f32 to vector<1x128xf32>
    %c0_13 = arith.constant 0 : index
    %c0_14 = arith.constant 0 : index
    %35 = vector.load %arg4[%c0_13, %c0_14] : memref<1x128xf32, #tpu.memory_space<vmem>>, vector<1x128xf32>
    tpu.vector_store %arg4[%c0_13, %c0_14], %34 {strides = array<i32>} : memref<1x128xf32, #tpu.memory_space<vmem>>, vector<1x128xf32>,
    return
  }
  func.func @transform_0(%arg0: i32) -> (i32, i32) {
    %c0_i32 = arith.constant 0 : i32
    %c0_i32_0 = arith.constant 0 : i32
    return %arg0, %c0_i32 : i32, i32
  }
  func.func @transform_1(%arg0: i32) -> (i32, i32) {
    %c0_i32 = arith.constant 0 : i32
    %c0_i32_0 = arith.constant 0 : i32
    return %arg0, %c0_i32 : i32, i32
  }
  func.func @transform_2(%arg0: i32) -> (i32, i32) {
    %c0_i32 = arith.constant 0 : i32
    %c0_i32_0 = arith.constant 0 : i32
    return %arg0, %c0_i32 : i32, i32
  }
  func.func @transform_3(%arg0: i32) -> (i32, i32) {
    %c0_i32 = arith.constant 0 : i32
    %c0_i32_0 = arith.constant 0 : i32
    return %arg0, %c0_i32 : i32, i32
  }
}

</mosaic_0001>

<bundles_post_ra>
// kernel: tpu_custom_call.1
= control target key start
LH: loop header
LB: loop body
LE: loop exit
PB: predicated region body
PF: predicated region fallthrough
CT: control target
= control target key end

     0   :  { %8 = vsyncpa [#allocation3], 0  ;;  %s292_s0 = inlined_call_operand.hbm [shape: f32[8,128], index: 0, kind: input, shape index: {}]   ;;  %s293_s1 = inlined_call_operand.hbm [shape: f32[8,128], index: 1, kind: input, shape index: {}]   ;;  %s294_s2 = inlined_call_operand.hbm [shape: f32[8,128], index: 2, kind: input, shape index: {}]   ;;  %s295_s3 = inlined_call_operand.hbm [shape: f32[1,128], index: 3, kind: output, shape index: {}]  }
   0x1   :  { %9 = vsyncpa [#allocation6], 0 }
   0x2   :  { %10 = vsyncpa [#allocation4], 0  ;;  %s220_s12 = smov [#allocation5]   ;;  %s221_s14 = smov [#allocation2]  }
   0x3   :  { %s27_s13 = sshll.u32 %s220_s12, 4  ;;  %s17_s15 = sshll.u32 %s221_s14, 4  ;;  %s28_s13 = int_to_ptr.vmem [resolvable:$true] %s27_s13  ;;  %s18_s15 = int_to_ptr.vmem [resolvable:$true] %s17_s15 }
   0x4   :  { %s126_s18 = scalar_lea.hbm %s293_s1, 128 }
   0x5   :  { %p127_p0 = scmp.ne.s32.totalorder %s293_s1, %s126_s18  ;;  %p130_p1 = scmp.lt.u32.totalorder %s126_s18, %s293_s1 }
   0x7   :  { %p132_p2 = pnand %p130_p1, %p127_p0 }
   0x9   :  { %135 = shalt.err (!%p132_p2)
}
   0xa   :  { %s136_s23 = scalar_lea.vmem %s28_s13, 128  ;;  %p141_p4 = scmp.lt.s32.totalorder %s28_s13, %s28_s13 }
   0xb   :  { %p137_p3 = scmp.ne.s32.totalorder %s28_s13, %s136_s23  ;;  %p142_p5 = scmp.lt.s32.totalorder %s136_s23, %s136_s23 }
   0xd   :  { %p143_p6 = por %p142_p5, %p141_p4 }
   0xf   :  { %p144_p7 = pnand %p143_p6, %p137_p3 }
  0x11   :  { %147 = shalt.err (!%p144_p7)
}
  0x12   :  { %30 = dma.hbm_to_vmem [thread:$0]  %s293_s1, 128, %s28_s13, [#allocation6]  }
  0x13   :  { %s148_s28 = scalar_lea.hbm %s292_s0, 128 }
  0x14   :  { %p149_p8 = scmp.ne.s32.totalorder %s292_s0, %s148_s28  ;;  %p152_p9 = scmp.lt.u32.totalorder %s148_s28, %s292_s0 }
  0x16   :  { %p154_p10 = pnand %p152_p9, %p149_p8 }
  0x18   :  { %157 = shalt.err (!%p154_p10)
}
  0x19   :  { %s158_s6 = scalar_lea.vmem %s18_s15, 128  ;;  %p163_p12 = scmp.lt.s32.totalorder %s18_s15, %s18_s15 }
  0x1a   :  { %p159_p11 = scmp.ne.s32.totalorder %s18_s15, %s158_s6  ;;  %p164_p13 = scmp.lt.s32.totalorder %s158_s6, %s158_s6 }
  0x1c   :  { %p165_p0 = por %p164_p13, %p163_p12 }
  0x1e   :  { %p166_p1 = pnand %p165_p0, %p159_p11 }
  0x20   :  { %169 = shalt.err (!%p166_p1)
}
  0x21   :  { %20 = dma.hbm_to_vmem [thread:$0]  %s292_s0, 128, %s18_s15, [#allocation3]  }
  0x22   :  { %s222_s8 = smov [#allocation7]   ;;  %s170_s12 = scalar_lea.hbm %s294_s2, 128 }
  0x23   :  { %s37_s9 = sshll.u32 %s222_s8, 4  ;;  %p171_p2 = scmp.ne.s32.totalorder %s294_s2, %s170_s12  ;;  %s38_s9 = int_to_ptr.vmem [resolvable:$true] %s37_s9 }
  0x24   :  { %p174_p3 = scmp.lt.u32.totalorder %s170_s12, %s294_s2 }
  0x26   :  { %p176_p4 = pnand %p174_p3, %p171_p2 }
  0x28   :  { %179 = shalt.err (!%p176_p4)
}
  0x29   :  { %s180_s18 = scalar_lea.vmem %s38_s9, 128  ;;  %p185_p6 = scmp.lt.s32.totalorder %s38_s9, %s38_s9 }
  0x2a   :  { %p181_p5 = scmp.ne.s32.totalorder %s38_s9, %s180_s18  ;;  %p186_p7 = scmp.lt.s32.totalorder %s180_s18, %s180_s18 }
  0x2c   :  { %p187_p8 = por %p186_p7, %p185_p6 }
  0x2e   :  { %p188_p9 = pnand %p187_p8, %p181_p5 }
  0x30   :  { %191 = shalt.err (!%p188_p9)
}
  0x31   :  { %40 = dma.hbm_to_vmem [thread:$0]  %s294_s2, 128, %s38_s9, [#allocation6]  }
  0x32   :  { %214 = dma.done.wait [#allocation3], 128  }
  0x33   :  { %215 = vsyncadd [#allocation3], 4294967168 }
  0x34   :  { %216 = dma.done.wait [#allocation6], 256  }
  0x35   :  { %217 = vsyncadd [#allocation6], 4294967040  ;;  %v50_v0 = vld [vmem:[#allocation2] sm:$0xff]  ;;  %v51_v1 = vld [vmem:[#allocation5] sm:$0xff]  ;;  %vm87_vm4 = vcmask 7168   ;;  %s223_s2 = smov [#allocation8]  }
  0x36   :  { %v52_v2 = vld [vmem:[#allocation7] sm:$0xff]  ;;  %v53_v3 = vsub.f32 %v50_v0, %v51_v1  ;;  %s106_s19 = sshll.u32 %s223_s2, 4  ;;  %s107_s19 = int_to_ptr.vmem [resolvable:$true] %s106_s19 }
  0x37   :  { %v65_v4 = vsub.f32 %v50_v0, %v52_v2  ;;  %s192_s21 = scalar_lea.vmem %s107_s19, 16  ;;  %s196_s22 = scalar_lea.vmem %s107_s19, 32 }
  0x38   :  { %v54_v5 = vadd.f32 1e-06, %v53_v3  ;;  %p193_p10 = scmp.ne.s32.totalorder %s107_s19, %s192_s21  ;;  %p197_p11 = scmp.lt.s32.totalorder %s107_s19, %s107_s19 }
  0x39   :  { %v66_v6 = vadd.f32 1e-06, %v65_v4  ;;  %p198_p12 = scmp.lt.s32.totalorder %s196_s22, %s192_s21 }
  0x3a   :  { %v55_v7 = vmul.f32 %v54_v5, %v54_v5 }
  0x3b   :  { %v67_v8 = vmul.f32 %v66_v6, %v66_v6  ;;  %p199_p13 = por %p198_p12, %p197_p11 }
  0x3c   :  { %56 = vadd.xlane.f32.xlu0 %v55_v7 }
  0x3d   :  { %p200_p0 = pnand %p199_p13, %p193_p10 }
  0x40   :  { %68 = vadd.xlane.f32.xlu0 %v67_v8 }
  0xc9   :  { %v57_v9 = vpop.xlane.xlu0 %56 }
  0xca   :  { %122 = vrsqrt.f32 %v57_v9  ;;  %vm60_vm0 = vcmp.eq.f32.partialorder %v57_v9, inf  ;;  %v63_v16 = vand.u32 2147483648, %v57_v9  ;;  %vm62_vm2 = vcmp.eq.f32.partialorder %v57_v9, 0.0 }
  0xcd   :  { %v69_v10 = vpop.xlane.xlu0 %68 }
  0xce   :  { %124 = vrsqrt.f32 %v69_v10  ;;  %vm72_vm1 = vcmp.eq.f32.partialorder %v69_v10, inf  ;;  %v75_v17 = vand.u32 2147483648, %v69_v10  ;;  %vm74_vm3 = vcmp.eq.f32.partialorder %v69_v10, 0.0 }
  0xd4   :  { %v123_v11 = vpop.eup %122 }
  0xd5   :  { %v59_v12 = vmul.f32 %v123_v11, %v57_v9 }
  0xd7   :  { %v61_v15 = vsel %vm60_vm0, %v57_v9, %v59_v12 }
  0xd8   :  { %v125_v13 = vpop.eup %124  ;;  %v64_v19 = vsel %vm62_vm2, %v63_v16, %v61_v15 }
  0xd9   :  { %v71_v14 = vmul.f32 %v125_v13, %v69_v10 }
  0xdb   :  { %v73_v18 = vsel %vm72_vm1, %v69_v10, %v71_v14 }
  0xdc   :  { %v76_v20 = vsel %vm74_vm3, %v75_v17, %v73_v18 }
  0xdd   :  { %v77_v21 = vsub.f32 %v64_v19, %v76_v20 }
  0xdf   :  { %v78_v22 = vadd.f32 1.0, %v77_v21 }
  0xe1   :  { %v79_v23 = vmax.f32 %v78_v22, 0.0 }
  0xe3   :  { %v88_v24 = vsel %vm87_vm4, %v79_v23, 0.0 }
  0xe4   :  { %89 = vadd.xlane.f32.xlu1 %v88_v24 }
 0x171   :  { %v90_v25 = vpop.xlane.xlu1 %89 }
 0x172   :  { %v91_v26 = vrot.slane %v90_v25, 4 }
 0x174   :  { %v92_v27 = vadd.f32 %v91_v26, %v90_v25 }
 0x176   :  { %v93_v28 = vrot.slane %v92_v27, 2 }
 0x178   :  { %v94_v29 = vadd.f32 %v93_v28, %v92_v27 }
 0x17a   :  { %v95_v30 = vrot.slane %v94_v29, 1 }
 0x17c   :  { %v96_v31 = vadd.f32 %v95_v30, %v94_v29 }
 0x17e   :  { %116 = vpush %v96_v31 }
 0x1af   :  { %s117_s20 = spop %116 }
 0x1b0   :  { %v98_v32 = vstv %s117_s20 }
 0x1b1   :  { %99 = vst [vmem:[#allocation8] sm:$0x1] %v98_v32 }
 0x1b2   :  { %203 = shalt.err (!%p200_p0)
}
 0x1b3   :  { %s204_s25 = scalar_lea.hbm %s295_s3, 16 }
 0x1b4   :  { %p205_p1 = scmp.ne.s32.totalorder %s295_s3, %s204_s25  ;;  %p208_p2 = scmp.lt.u32.totalorder %s204_s25, %s295_s3 }
 0x1b6   :  { %p210_p3 = pnand %p208_p2, %p205_p1 }
 0x1b8   :  { %213 = shalt.err (!%p210_p3)
}
 0x1b9   :  { %109 = dma.vmem_to_hbm [thread:$0]  %s107_s19, 16, %s295_s3, [#allocation4]  }
 0x1ba   :  { %218 = dma.done.wait [#allocation4], 16  }
 0x1bb   :  { %219 = vsyncadd [#allocation4], 4294967280 }
 0x1bc   :  { %113 = vsyncpa [#allocation3], 1 }
 0x1bd   :  { %114 = vsyncpa [#allocation6], 1 }
 0x1be   :  { %115 = vsyncpa [#allocation4], 1 }

</bundles_post_ra>
